<compile_context>
chip_gen: v6e
topology: v6e:2x2x1
jax: 0.10.0
libtpu: 0.0.40
codegen_flags: <defaults>
</compile_context>

<pallas_src>
import functools

import jax
import jax.numpy as jnp
from jax.experimental import pallas as pl
from jax.experimental.pallas import tpu as pltpu


def _pick_hw_tile(hw, target=1024):
    """Largest multiple-of-128 divisor of hw that is <= target; falls back to hw."""
    if hw % 128 != 0:
        return hw                      # full-extent block (legal: equals array dim)
    t = min(target, hw)
    t -= t % 128
    while hw % t != 0:
        t -= 128
    return t


def _pool_gate_kernel(x_ref, w_ref, weff_ref, acc_ref, *, inv_hw):
    """Phase 1: stream x tiles, accumulate spatial mean, emit per-batch W_eff.

    x_ref:    (C, HW_t)  input tile (batch dim squeezed)
    w_ref:    (3, C, C)  stacked conv1/conv2/conv3 weights, resident
    weff_ref: (C, C)     per-batch effective weight (written at last hw step only)
    acc_ref:  (C, 1)     f32 spatial-sum accumulator (VMEM scratch)
    """
    h = pl.program_id(1)

    @pl.when(h == 0)
    def _init():
        acc_ref[...] = jnp.zeros_like(acc_ref)

    acc_ref[...] += jnp.sum(x_ref[...].astype(jnp.float32), axis=-1, keepdims=True)

    @pl.when(h == pl.num_programs(1) - 1)
    def _finalize():
        w1 = w_ref[0].astype(jnp.float32)
        w2 = w_ref[1].astype(jnp.float32)
        w3 = w_ref[2].astype(jnp.float32)
        mean_x = acc_ref[...] * inv_hw                                        # (C, 1)
        # mean_hw(conv1(x)) == W1 @ mean_hw(x): 1x1 conv is linear.
        avg_b1 = jnp.dot(w1, mean_x, preferred_element_type=jnp.float32)      # (C, 1)
        b3 = jax.nn.sigmoid(
            jnp.dot(w2, avg_b1, preferred_element_type=jnp.float32))          # (C, 1)
        # Fold the channel gate into W1's rows: (diag(1+b3) @ W1)[c, i] = (1+b3[c])*W1[c, i].
        w1_gated = w1 * (1.0 + b3)                                            # (C, C)
        weff_ref[...] = jnp.dot(
            w3, w1_gated, preferred_element_type=jnp.float32
        ).astype(weff_ref.dtype)


def _apply_kernel(weff_ref, x_ref, o_ref):
    """Phase 2: out_tile = W_eff @ x_tile.  Fully data-parallel over (B, HW tiles)."""
    w = weff_ref[...].astype(x_ref.dtype)
    o_ref[...] = jnp.dot(
        w, x_ref[...], preferred_element_type=jnp.float32
    ).astype(o_ref.dtype)


def global_pooling_module(x_nchw, w1, w2, w3, *, hw_tile=1024):
    """x_nchw: (B, C, H, W); w*: (C, C, 1, 1) PyTorch 1x1 conv weights (no bias)."""
    B, C, H, W = x_nchw.shape
    HW = H * W
    hw_t = _pick_hw_tile(HW, hw_tile)
    n_hw = HW // hw_t

    x = x_nchw.reshape(B, C, HW)               # free reshape, channel-major kept
    w_all = jnp.stack([w1.reshape(C, C),       # (3, C, C) (Cout, Cin)
                       w2.reshape(C, C),
                       w3.reshape(C, C)])

    # ---- Phase 1: per-batch gated effective weight ---------------------------------
    weff = pl.pallas_call(
        functools.partial(_pool_gate_kernel, inv_hw=1.0 / HW),
        out_shape=jax.ShapeDtypeStruct((B, C, C), jnp.float32),
        grid_spec=pltpu.PrefetchScalarGridSpec(
            num_scalar_prefetch=0,
            grid=(B, n_hw),
            in_specs=[
                pl.BlockSpec((None, C, hw_t), lambda b, h: (b, 0, h)),
                pl.BlockSpec((3, C, C), lambda b, h: (0, 0, 0)),
            ],
            out_specs=pl.BlockSpec((None, C, C), lambda b, h: (b, 0, 0)),
            scratch_shapes=[pltpu.VMEM((C, 1), jnp.float32)],
        ),
        compiler_params=pltpu.CompilerParams(
            dimension_semantics=("parallel", "arbitrary")),
    )(x, w_all)

    # ---- Phase 2: out = W_eff @ x, streamed over HW tiles ---------------------------
    out = pl.pallas_call(
        _apply_kernel,
        out_shape=jax.ShapeDtypeStruct((B, C, HW), x.dtype),
        grid_spec=pltpu.PrefetchScalarGridSpec(
            num_scalar_prefetch=0,
            grid=(B, n_hw),
            in_specs=[
                pl.BlockSpec((None, C, C), lambda b, h: (b, 0, 0)),
                pl.BlockSpec((None, C, hw_t), lambda b, h: (b, 0, h)),
            ],
            out_specs=pl.BlockSpec((None, C, hw_t), lambda b, h: (b, 0, h)),
        ),
        compiler_params=pltpu.CompilerParams(
            dimension_semantics=("parallel", "parallel")),
    )(weff, x)

    return out.reshape(B, C, H, W)             # free reshape back to NCHW


def reference(x_nchw, w1, w2, w3):
    """Pure-JAX reference mirroring the PyTorch forward (NCHW)."""
    C = x_nchw.shape[1]
    W1 = w1.reshape(C, C)
    W2 = w2.reshape(C, C)
    W3 = w3.reshape(C, C)
    conv1x1 = lambda inp, w: jnp.einsum('bchw,oc->bohw', inp, w)
    b1 = conv1x1(x_nchw, W1)
    avg = jnp.mean(b1, axis=(2, 3), keepdims=True)
    b2 = conv1x1(avg, W2)
    b3 = jax.nn.sigmoid(b2)
    b4 = b1 + b3 * b1
    return conv1x1(b4, W3)


if __name__ == "__main__":
    B, C, H, W = 2, 4, 16, 16   # inchannels == outchannels == 4
    key = jax.random.PRNGKey(0)
    kx, k1, k2, k3 = jax.random.split(key, 4)
    x = jax.random.normal(kx, (B, C, H, W), dtype=jnp.float32)
    # Deterministic conv weights, PyTorch shape (Cout, Cin, 1, 1), no bias.
    w1 = jax.random.normal(k1, (C, C, 1, 1), dtype=jnp.float32) * 0.1
    w2 = jax.random.normal(k2, (C, C, 1, 1), dtype=jnp.float32) * 0.1
    w3 = jax.random.normal(k3, (C, C, 1, 1), dtype=jnp.float32) * 0.1

    # hw_tile=128 at this tiny demo size so the multi-tile accumulation path
    # (n_hw = 2 spatial tiles) is actually exercised; default (1024) is for real sizes.
    out = global_pooling_module(x, w1, w2, w3, hw_tile=128)
    out = jax.block_until_ready(out)

    ref = reference(x, w1, w2, w3)
    assert out.shape == (B, C, H, W)
    # Gate fold (W_eff = W3·diag(1+b3)·W1) is exact in real arithmetic; tolerance
    # covers the fp reassociation it introduces.
    assert jnp.allclose(out, ref, atol=1e-4, rtol=1e-4), \
        f"max err {jnp.max(jnp.abs(out - ref))}"
    print("KERNEL_OK")
</pallas_src>

<mosaic_0001>
module attributes {stable_mosaic.version = 11 : i64} {
  func.func @_pool_gate_kernel(%arg0: i32, %arg1: i32, %arg2: memref<1x4x128xf32, #tpu.memory_space<vmem>>, %arg3: memref<3x4x4xf32, #tpu.memory_space<vmem>>, %arg4: memref<1x4x4xf32, #tpu.memory_space<vmem>>, %arg5: memref<4x1xf32, #tpu.memory_space<vmem>>) attributes {dimension_semantics = [#tpu.dimension_semantics<parallel>, #tpu.dimension_semantics<arbitrary>], iteration_bounds = array<i64: 2, 2>, scalar_prefetch = 0 : i64, scratch_operands = 1 : i64, tpu.core_type = #tpu.core_type<tc>, window_params = [{transform_indices = @transform_0, window_bounds = array<i64: 1, 4, 128>}, {pipeline_mode = #tpu.pipeline_mode<synchronous>, transform_indices = @transform_1, window_bounds = array<i64: 3, 4, 4>}, {transform_indices = @transform_2, window_bounds = array<i64: 1, 4, 4>}]} {
    %c0_i32 = arith.constant 0 : i32
    %0 = arith.cmpi eq, %arg1, %c0_i32 : i32
    %1 = arith.extui %0 : i1 to i32
    %c0_i32_0 = arith.constant 0 : i32
    %2 = arith.cmpi ne, %1, %c0_i32_0 : i32
    scf.if %2 {
      %cst_8 = arith.constant 0.000000e+00 : f32
      %13 = vector.broadcast %cst_8 : f32 to vector<4x1xf32>
      %c0_9 = arith.constant 0 : index
      %c0_10 = arith.constant 0 : index
      %14 = vector.load %arg5[%c0_9, %c0_10] : memref<4x1xf32, #tpu.memory_space<vmem>>, vector<4x1xf32>
      tpu.vector_store %arg5[%c0_9, %c0_10], %13 {strides = array<i32>} : memref<4x1xf32, #tpu.memory_space<vmem>>, vector<4x1xf32>,
    } else {
    }
    %c0 = arith.constant 0 : index
    %c0_1 = arith.constant 0 : index
    %3 = vector.load %arg5[%c0, %c0_1] : memref<4x1xf32, #tpu.memory_space<vmem>>, vector<4x1xf32>
    %c0_2 = arith.constant 0 : index
    %c0_3 = arith.constant 0 : index
    %c0_4 = arith.constant 0 : index
    %4 = vector.load %arg2[%c0_2, %c0_3, %c0_4] : memref<1x4x128xf32, #tpu.memory_space<vmem>>, vector<1x4x128xf32>
    %5 = vector.shape_cast %4 : vector<1x4x128xf32> to vector<4x128xf32>
    %cst = arith.constant dense<0.000000e+00> : vector<4xf32>
    %6 = vector.multi_reduction <add>, %5, %cst [1] : vector<4x128xf32> to vector<4xf32>
    %7 = vector.shape_cast %6 : vector<4xf32> to vector<4x1xf32>
    %8 = arith.addf %3, %7 : vector<4x1xf32>
    %c0_5 = arith.constant 0 : index
    %c0_6 = arith.constant 0 : index
    %9 = vector.load %arg5[%c0_5, %c0_6] : memref<4x1xf32, #tpu.memory_space<vmem>>, vector<4x1xf32>
    tpu.vector_store %arg5[%c0_5, %c0_6], %8 {strides = array<i32>} : memref<4x1xf32, #tpu.memory_space<vmem>>, vector<4x1xf32>,
    %c1_i32 = arith.constant 1 : i32
    %10 = arith.cmpi eq, %arg1, %c1_i32 : i32
    %11 = arith.extui %10 : i1 to i32
    %c0_i32_7 = arith.constant 0 : i32
    %12 = arith.cmpi ne, %11, %c0_i32_7 : i32
    scf.if %12 {
      %c0_8 = arith.constant 0 : index
      %c0_9 = arith.constant 0 : index
      %c0_10 = arith.constant 0 : index
      %13 = vector.load %arg3[%c0_8, %c0_9, %c0_10] : memref<3x4x4xf32, #tpu.memory_space<vmem>>, vector<1x4x4xf32>
      %14 = vector.shape_cast %13 : vector<1x4x4xf32> to vector<4x4xf32>
      %c1 = arith.constant 1 : index
      %c0_11 = arith.constant 0 : index
      %c0_12 = arith.constant 0 : index
      %15 = vector.load %arg3[%c1, %c0_11, %c0_12] : memref<3x4x4xf32, #tpu.memory_space<vmem>>, vector<1x4x4xf32>
      %16 = vector.shape_cast %15 : vector<1x4x4xf32> to vector<4x4xf32>
      %c2 = arith.constant 2 : index
      %c0_13 = arith.constant 0 : index
      %c0_14 = arith.constant 0 : index
      %17 = vector.load %arg3[%c2, %c0_13, %c0_14] : memref<3x4x4xf32, #tpu.memory_space<vmem>>, vector<1x4x4xf32>
      %18 = vector.shape_cast %17 : vector<1x4x4xf32> to vector<4x4xf32>
      %c0_15 = arith.constant 0 : index
      %c0_16 = arith.constant 0 : index
      %19 = vector.load %arg5[%c0_15, %c0_16] : memref<4x1xf32, #tpu.memory_space<vmem>>, vector<4x1xf32>
      %cst_17 = arith.constant 3.906250e-03 : f32
      %20 = vector.broadcast %cst_17 : f32 to vector<4x1xf32>
      %21 = arith.mulf %19, %20 : vector<4x1xf32>
      %cst_18 = arith.constant dense<0.000000e+00> : vector<4x1xf32>
      %22 = tpu.matmul %14, %21, %cst_18 {dimension_numbers = #tpu.dot_dimension_numbers<[1], [0], [0], [1], [0, 0, 1, 1], [], []>} : vector<4x4xf32>, vector<4x1xf32>, vector<4x1xf32> -> vector<4x1xf32>
      %cst_19 = arith.constant dense<0.000000e+00> : vector<4x1xf32>
      %23 = tpu.matmul %16, %22, %cst_19 {dimension_numbers = #tpu.dot_dimension_numbers<[1], [0], [0], [1], [0, 0, 1, 1], [], []>} : vector<4x4xf32>, vector<4x1xf32>, vector<4x1xf32> -> vector<4x1xf32>
      %24 = arith.negf %23 : vector<4x1xf32>
      %25 = math.exp %24 : vector<4x1xf32>
      %cst_20 = arith.constant 1.000000e+00 : f32
      %26 = vector.broadcast %cst_20 : f32 to vector<4x1xf32>
      %27 = arith.addf %26, %25 : vector<4x1xf32>
      %28 = arith.divf %26, %27 : vector<4x1xf32>
      %cst_21 = arith.constant 1.000000e+00 : f32
      %29 = vector.broadcast %cst_21 : f32 to vector<4x1xf32>
      %30 = arith.addf %29, %28 : vector<4x1xf32>
      %31 = vector.broadcast %30 : vector<4x1xf32> to vector<4x4xf32>
      %32 = arith.mulf %14, %31 : vector<4x4xf32>
      %cst_22 = arith.constant dense<0.000000e+00> : vector<4x4xf32>
      %33 = tpu.matmul %18, %32, %cst_22 {dimension_numbers = #tpu.dot_dimension_numbers<[1], [0], [0], [1], [0, 0, 1, 1], [], []>} : vector<4x4xf32>, vector<4x4xf32>, vector<4x4xf32> -> vector<4x4xf32>
      %c0_23 = arith.constant 0 : index
      %c0_24 = arith.constant 0 : index
      %c0_25 = arith.constant 0 : index
      %34 = vector.load %arg4[%c0_23, %c0_24, %c0_25] : memref<1x4x4xf32, #tpu.memory_space<vmem>>, vector<1x4x4xf32>
      %35 = vector.shape_cast %34 : vector<1x4x4xf32> to vector<4x4xf32>
      %36 = vector.shape_cast %33 : vector<4x4xf32> to vector<1x4x4xf32>
      tpu.vector_store %arg4[%c0_23, %c0_24, %c0_25], %36 {strides = array<i32>} : memref<1x4x4xf32, #tpu.memory_space<vmem>>, vector<1x4x4xf32>,
    } else {
    }
    return
  }
  func.func @transform_0(%arg0: i32, %arg1: i32) -> (i32, i32, i32) {
    %c0_i32 = arith.constant 0 : i32
    %c0_i32_0 = arith.constant 0 : i32
    return %arg0, %c0_i32, %arg1 : i32, i32, i32
  }
  func.func @transform_1(%arg0: i32, %arg1: i32) -> (i32, i32, i32) {
    %c0_i32 = arith.constant 0 : i32
    %c0_i32_0 = arith.constant 0 : i32
    %c0_i32_1 = arith.constant 0 : i32
    %c0_i32_2 = arith.constant 0 : i32
    return %c0_i32, %c0_i32_0, %c0_i32_1 : i32, i32, i32
  }
  func.func @transform_2(%arg0: i32, %arg1: i32) -> (i32, i32, i32) {
    %c0_i32 = arith.constant 0 : i32
    %c0_i32_0 = arith.constant 0 : i32
    %c0_i32_1 = arith.constant 0 : i32
    return %arg0, %c0_i32, %c0_i32_0 : i32, i32, i32
  }
}

</mosaic_0001>

<bundles_post_ra>
// kernel: tpu_custom_call.1
= control target key start
LH: loop header
LB: loop body
LE: loop exit
PB: predicated region body
PF: predicated region fallthrough
CT: control target
= control target key end

     0   :  { %s1162_s0 = inlined_call_operand.hbm [shape: f32[2,4,256], index: 0, kind: input, shape index: {}]   ;;  %s1163_s1 = inlined_call_operand.hbm [shape: f32[3,4,4], index: 1, kind: input, shape index: {}]   ;;  %s1164_s2 = inlined_call_operand.hbm [shape: f32[2,4,4], index: 2, kind: output, shape index: {}]  }
   0x1   :  { %1172 = sst [smem:[#allocation17_spill]] %s1163_s1 }
   0x2   :  { %1173 = sst [smem:[#allocation18_spill]] %s1164_s2 }
   0x3   :  { %7 = vsyncpa [#allocation4], 0 }
   0x4   :  { %9 = vsyncpa [#allocation4 + $0x1], 0 }
   0x5   :  { %10 = vsyncpa [#allocation7], 0 }
   0x6   :  { %11 = vsyncpa [#allocation5], 0 }
   0x7   :  { %13 = vsyncpa [#allocation5 + $0x1], 0  ;;  %s941_s9 = smov 0   ;;  %s943_s10 = smov 0  }
   0x8   :  { %s945_s11 = smov 0   ;;  %s947_s12 = smov 0  }
   0x9   :  { %s949_s13 = smov 0   ;;  %s951_s14 = smov 0  }
   0xa   :  { %s953_s15 = smov 0   ;;  %s955_s16 = smov 0  }
   0xb   :  { %s957_s17 = smov 0   ;;  %s959_s18 = smov 0  }
   0xc   :  { %s961_s19 = smov 0  }
   0xd LB: > { %1174 = sst [smem:[#allocation12_spill]] %s875_s9  ;;  %s567_s20 = sadd.s32 4294967295, %s915_s19   ;;  %s915_s19 = sphi %s961_s19, %s19_s19   ;;  %s911_s18 = sphi %s959_s18, %s1204_s18   ;;  %s907_s17 = sphi %s957_s17, %s1203_s17   ;;  %s903_s16 = sphi %s955_s16, %s1202_s16   ;;  %s899_s15 = sphi %s953_s15, %s1201_s15   ;;  %s895_s14 = sphi %s951_s14, %s1200_s14   ;;  %s891_s13 = sphi %s949_s13, %s1199_s13   ;;  %s887_s12 = sphi %s947_s12, %s1198_s12   ;;  %s883_s11 = sphi %s945_s11, %s1197_s11   ;;  %s879_s10 = sphi %s943_s10, %s1196_s10   ;;  %s875_s9 = sphi %s941_s9, %s1195_s9  }
   0xe   : > { %1175 = sst [smem:[#allocation13_spill]] %s903_s16  ;;  %s568_s21 = sadd.s32 4294967294, %s915_s19  }
   0xf   : > { %p53_p0 = scmp.ne.s32.totalorder %s891_s13, %s887_s12  ;;  %p997_p1 = scmp.eq.s32.totalorder %s567_s20, 0 }
  0x10   : > { %p97_p2 = scmp.ne.s32.totalorder %s883_s11, %s879_s10  ;;  %p98_p3 = scmp.eq.s32.totalorder %s567_s20, 3 }
  0x11   : > { %p1005_p4 = por %p997_p1, %p53_p0  ;;  %p103_p5 = scmp.ne.s32.totalorder %s879_s10, %s875_s9 }
  0x12   : > { %p1011_p6 = por %p98_p3, %p97_p2  ;;  %p104_p7 = scmp.eq.s32.totalorder %s568_s21, 3 }
  0x13   : > { %p569_p8 = scmp.ge.s32.totalorder %s915_s19, 1  ;;  %p111_p9 = scmp.lt.s32.totalorder %s915_s19, 5 }
  0x14   : > { %s1178_s24 = scalar_select %p1011_p6, 1, 0 }
  0x15   : > { %p1017_p10 = por %p104_p7, %p103_p5  ;;  %p1021_p11 = pnand %p569_p8, %p111_p9 }
  0x16   : > { %1179 = sst [smem:[#allocation14_spill]] %s1178_s24  ;;  %s917_s27 = smov [#allocation6]  }
  0x17   : > { %s1180_s25 = scalar_select %p1017_p10, 1, 0 }
  0x18   : > { %s123_s28 = sshll.u32 %s917_s27, 4  ;;  %p621_p12 = pneg %p1021_p11  ;;  %s124_s28 = int_to_ptr.vmem [resolvable:$true] %s123_s28 }
  0x19   : > { %1181 = sst [smem:[#allocation15_spill]] %s1180_s25  ;;  %s748_s29 = scalar_lea.vmem %s124_s28, 192 }
  0x1a   : > { %p622_p13 = pnand %p621_p12, %p997_p1  ;;  %p749_p2 = scmp.ne.s32.totalorder %s124_s28, %s748_s29 }
  0x1b   : > { %p756_p7 = scmp.lt.s32.totalorder %s124_s28, %s124_s28  ;;  %p757_p6 = scmp.lt.s32.totalorder %s748_s29, %s748_s29 }
  0x1c   : > { %p739_p0 = pneg %p622_p13 }
  0x1d   : > { %p758_p10 = por %p757_p6, %p756_p7 }
  0x1e   : > { %p751_p3 = pnand %p749_p2, %p739_p0 }
  0x20   : > { %p752_p5 = pneg %p751_p3 }
  0x22   : > { %p759_p8 = pnand %p758_p10, %p752_p5 }
  0x24   : > { %762 = shalt.err (!%p759_p8)
}
  0x25   : > { %s918_s30 = smov 64   ;;  %s919_s3 = smov 4  }
  0x26   : > { %s1183_s1 = sld [smem:[#allocation17_spill]]  ;;  %s28_s6 = sadd.s32 1, %s907_s17 }
  0x27   : > { %s31_s7 = sadd.s32 1, %s911_s18  ;;  %p29_p6 = scmp.ge.s32.totalorder %s28_s6, 2 }
  0x28   : > { %s40_s8 = sadd.s32 1, %s895_s14  ;;  %p47_p9 = scmp.ne.s32.totalorder %s895_s14, %s891_s13 }
  0x29   : > { %p48_p10 = scmp.eq.s32.totalorder %s915_s19, 0  ;;  %s1206_s6 = smov (%p29_p6, %s28_s6), 0 }
  0x2a   : > { %1184 = sst [smem:[#allocation16_spill]] %s1206_s6  ;;  %s1208_s7 = smov (!%p29_p6, %s31_s7), %s911_s18 }
  0x2b   : > { %s36_s12 = ssub.s32 %s907_s17, %s1206_s6  ;;  %p1043_p12 = por %p48_p10, %p47_p9 }
  0x2c   : > { %624 = dma.hbm_to_vmem [thread:$0]  (!%p622_p13), %s1183_s1, 192, %s124_s28, [#allocation7], %s918_s30, %s918_s30, %s919_s3  }
  0x2d   : > { %p33_p13 = scmp.ge.s32.totalorder %s1208_s7, 2  ;;  %s87_s21 = sadd.s32 1, %s883_s11 }
  0x2e   : > { %p634_p0 = scmp.lt.s32.totalorder %s915_s19, 4  ;;  %s137_s27 = sand.u32 1, %s895_s14  }
  0x2f   : > { %s1210_s7 = smov (%p33_p13, %s1208_s7), 0  ;;  %s572_s28 = sshll.u32 %s137_s27, 2 }
  0x30   : > { %s35_s29 = ssub.s32 %s911_s18, %s1210_s7  ;;  %s573_s3 = sshll.u32 %s911_s18, 1 }
  0x31   : > { %s37_s30 = sor.u32 %s36_s12, %s35_s29  ;;  %p85_p2 = scmp.eq.s32.totalorder %s35_s29, 0 }
  0x32   : > { %p38_p3 = scmp.eq.s32.totalorder %s37_s30, 0  ;;  %s146_s1 = sadd.s32 %s907_s17, %s573_s3 }
  0x33   : > { %s1056_s4 = scalar_select %p85_p2, %s883_s11, %s87_s21  }
  0x34   : > { %s1059_s5 = scalar_select %p38_p3, %s895_s14, %s40_s8  }
  0x35   : > { %s141_s6 = scalar_lea.vmem [#allocation3], %s572_s28  ;;  %s574_s9 = sshll.u32 %s146_s1, 6 }
  0x36   : > { %s150_s25 = sshll.u32 %s141_s6, 4  ;;  %s148_s16 = scalar_lea.hbm %s1162_s0, %s574_s9  ;;  %s151_s25 = int_to_ptr.vmem [resolvable:$true] %s150_s25 }
  0x37   : > { %p1069_p5 = pnand %p634_p0, %p1043_p12  ;;  %s138_s21 = scalar_lea.sflag [#allocation4], %s137_s27 }
  0x38   : > { %s776_s8 = scalar_lea.vmem %s151_s25, 64  ;;  %s920_s1 = smov [#allocation3]  }
  0x39   : > { %p765_p7 = pneg %p1069_p5  ;;  %p777_p8 = scmp.ne.s32.totalorder %s151_s25, %s776_s8 }
  0x3a   : > { %s781_s6 = sshll.u32 %s920_s1, 4  ;;  %s782_s6 = int_to_ptr.vmem [resolvable:$false] %s781_s6 }
  0x3b   : > { %p779_p6 = pnand %p777_p8, %p765_p7  ;;  %s783_s28 = scalar_lea.vmem %s782_s6, 128 }
  0x3c   : > { %p784_p10 = scmp.lt.s32.totalorder %s151_s25, %s782_s6  ;;  %p785_p13 = scmp.lt.s32.totalorder %s783_s28, %s776_s8 }
  0x3d   : > { %p780_p9 = pneg %p779_p6 }
  0x3e   : > { %p786_p2 = por %p785_p13, %p784_p10 }
  0x40   : > { %p787_p3 = pnand %p786_p2, %p780_p9 }
  0x42   : > { %790 = shalt.err (!%p787_p3)
}
  0x43   : > { %628 = dma.hbm_to_vmem [thread:$0]  (!%p1069_p5), %s148_s16, 64, %s151_s25, %s138_s21  }
  0x44   : > { %159 = sbr.rel (%p1021_p11) target bundleno = 1008 (0x3f0), region = 28  ;;  %s161_s2 = sand.u32 (!%p1021_p11), 1, %s891_s13  }
  0x45   : > { %s576_s9 = sshll.u32 (!%p1021_p11), %s161_s2, 2  ;;  %s162_s24 = scalar_lea.sflag (!%p1021_p11), [#allocation4], %s161_s2 }
  0x46   : > { %s165_s20 = scalar_lea.vmem (!%p1021_p11), [#allocation3], %s576_s9 }
  0x49   : > { %862 = dma.done.wait (%p1005_p4), %s162_s24, 64  }
  0x4a   : > { %864 = vsyncadd (%p1005_p4), %s162_s24, 4294967232 }
  0x4b   : > { %866 = dma.done.wait (%p997_p1), [#allocation7], 192  }
  0x4c   : > { %868 = vsyncadd (%p997_p1), [#allocation7], 4294967104  ;;  %s187_s16 = sand.u32 1, %s879_s10   ;;  %p579_p11 = scmp.ne.s32.totalorder %s899_s15, 0 }
  0x4d   : > { %s1091_s25 = sshll.u32 %s187_s16, 2 }
  0x4e   : > { %s189_s26 = scalar_lea.vmem [#allocation8], %s1091_s25  ;;  %193 = sbr.rel (%p579_p11) target bundleno = 85 (0x55), region = 40 }
  0x53   : > { %vm194_vm0 = vcmask 3072   ;;  %v921_v0 = vmov 0.0  }
  0x54   : > { %195 = vst.msk [vmem:[#allocation2] sm:$0xf] %vm194_vm0, %v921_v0 }
  0x55 PF: > { %v197_v1 = vld [vmem:[%s165_s20] sm:$0xf]  ;;  %vm198_vm1 = vcmask 1043456   ;;  %vm203_vm2 = vcmask 3072   ;;  %p580_p1 = scmp.ne.s32.totalorder %s899_s15, 1 }
  0x56   : > { %v199_v2 = vsel %vm198_vm1, %v197_v1, 0.0 }
  0x57   : > { %200 = vadd.xlane.f32.xlu0 %v199_v2 }
  0x5b   : > { %v196_v3 = vld [vmem:[#allocation2] sm:$0xf] }
  0xdf   : > { %208 = sbr.rel (%p580_p1) target bundleno = 981 (0x3d5), region = 44 }
  0xe0   : > { %v201_v4 = vpop.xlane.xlu0 %200 }
  0xe1   : > { %v202_v5 = vadd.f32 %v201_v4, %v196_v3 }
  0xe3   : > { %204 = vst.msk [vmem:[#allocation2] sm:$0xf] %vm203_vm2, %v202_v5 }
  0xe4   : > { %v922_v7 = vmov 0.0   ;;  %vm923_vm3 = vmmov 0   ;;  %v209_v9 = vld [vmem:[#allocation6] sm:$0xf]  ;;  %vm216_vm4 = vcmask 31744   ;;  %v924_v13 = vmov 0  }
  0xe5   : > { %598 = vmatprep.subr.mxu0 %v922_v7  ;;  %600 = vmatprep.mubr.msk.f32.mxu0 %vm923_vm3, %v922_v7  ;;  %v211_v10 = vld [vmem:[#allocation6 + $0x4] sm:$0xf]  ;;  %v213_v23 = vld [vmem:[#allocation6 + $0x8] sm:$0xf]  ;;  %vm458_vm5 = vcmask 27648  }
  0xe6   : > { %603 = vmatprep.subr.mxu1 %v922_v7  ;;  %605 = vmatprep.mubr.msk.f32.mxu1 %vm923_vm3, %v922_v7 }
  0xe7   : > { %732 = vset.pattern.permute.xlu0 %v924_v13 }
  0xea   : > { %v214_v6 = vld [vmem:[#allocation2] sm:$0xf] }
  0xeb   : > { %v215_v8 = vmul.f32 0.00390625, %v214_v6 }
  0xed   : > { %599 = vmatpush3.msk.msra.mxu0 %vm198_vm1, %v215_v8 }
  0xee   : > { %601 = vmatmul.mubr.msk.f32.vlgmr.msra.gmra.mxu0 %vm216_vm4, %v209_v9  ;;  %608 = vmatprep.subr.mxu0 %v922_v7 }
  0xef   : > { %610 = vmatprep.mubr.msk.f32.mxu0 %vm923_vm3, %v922_v7 }
 0x1ae   : > { %v289_v11 = vpop.f32.mrf.mxu0 }
 0x1af   : > { %604 = vmatpush3.msk.msra.mxu1 %vm198_vm1, %v289_v11 }
 0x1b0   : > { %v602_v12 = vpop.f32.mrf.mxu0  ;;  %606 = vmatmul.mubr.msk.f32.vlgmr.msra.gmra.mxu1 %vm216_vm4, %v211_v10 }
 0x270   : > { %v365_v14 = vpop.f32.mrf.mxu1 }
 0x271   : > { %v585_v15 = vmul.f32 -1.442695, %v365_v14 }
 0x272   : > { %v607_v16 = vpop.f32.mrf.mxu1 }
 0x273   : > { %733 = vpow2.f32 %v585_v15 }
 0x280   : > { %v734_v17 = vpop.eup %733 }
 0x281   : > { %v372_v18 = vadd.f32 1.0, %v734_v17 }
 0x283   : > { %735 = vrcp.f32 %v372_v18 }
 0x290   : > { %v736_v19 = vpop.eup %735 }
 0x291   : > { %v375_v20 = vadd.f32 1.0, %v736_v19 }
 0x293   : > { %378 = vperm.xlu0 %732, %v375_v20  }
 0x30e   : > { %v379_v21 = vpop.permute.xlu0 %378 }
 0x30f   : > { %v381_v22 = vmul.f32 %v379_v21, %v209_v9 }
 0x311   : > { %609 = vmatpush3.msk.msra.mxu0 %vm198_vm1, %v381_v22 }
 0x312   : > { %611 = vmatmul.mubr.msk.f32.vlgmr.msra.gmra.mxu0 %vm216_vm4, %v213_v23 }
 0x3d2   : > { %v454_v24 = vpop.f32.mrf.mxu0 }
 0x3d3   : > { %459 = vst.msk [vmem:[%s189_s26] sm:$0xf] %vm458_vm5, %v454_v24 }
 0x3d4   : > { %v612_v25 = vpop.f32.mrf.mxu0 }
 0x3d5 PF: > { %s1187_s15 = sld [smem:[#allocation13_spill]]  ;;  %s474_s12 = sshll.u32 %s189_s26, 4  ;;  %s475_s12 = int_to_ptr.vmem [resolvable:$true] %s474_s12 }
 0x3d6   : > { %s1188_s22 = sld [smem:[#allocation14_spill]]  ;;  %s461_s21 = scalar_lea.sflag [#allocation5], %s187_s16 }
 0x3d7   : > { %s1189_s30 = sld [smem:[#allocation18_spill]]  ;;  %s791_s8 = scalar_lea.vmem %s475_s12, 64 }
 0x3d8   : > { %p792_p4 = scmp.ne.s32.totalorder %s475_s12, %s791_s8  ;;  %s925_s1 = smov [#allocation8]  }
 0x3d9   : > { %s795_s6 = sshll.u32 %s925_s1, 4  ;;  %s796_s6 = int_to_ptr.vmem [resolvable:$false] %s795_s6 }
 0x3da   : > { %s797_s28 = scalar_lea.vmem %s796_s6, 128  ;;  %p798_p7 = scmp.lt.s32.totalorder %s475_s12, %s796_s6 }
 0x3db   : > { %s589_s23 = sshll.u32 %s1187_s15, 6  ;;  %p799_p8 = scmp.lt.s32.totalorder %s797_s28, %s791_s8 }
 0x3dc   : > { %p1190_p12 = scmp.ne.s32.totalorder %s1188_s22, 0 }
 0x3dd   : > { %s472_s3 = scalar_lea.hbm %s1189_s30, %s589_s23  ;;  %p800_p6 = por %p799_p8, %p798_p7 }
 0x3de   : > { %p793_p0 = pnand %p792_p4, %p1190_p12 }
 0x3e0   : > { %p794_p5 = pneg %p793_p0 }
 0x3e2   : > { %p801_p9 = pnand %p800_p6, %p794_p5 }
 0x3e4   : > { %804 = shalt.err (!%p801_p9)
}
 0x3e5   : > { %s805_s2 = scalar_lea.hbm %s472_s3, 64  ;;  %s809_s20 = scalar_lea.hbm %s1189_s30, 128 }
 0x3e6   : > { %p806_p10 = scmp.ne.s32.totalorder %s472_s3, %s805_s2  ;;  %p810_p3 = scmp.lt.s32.totalorder %s472_s3, %s1189_s30 }
 0x3e7   : > { %p811_p11 = scmp.lt.s32.totalorder %s809_s20, %s805_s2 }
 0x3e8   : > { %p807_p13 = pnand %p806_p10, %p1190_p12 }
 0x3e9   : > { %p812_p1 = por %p811_p11, %p810_p3 }
 0x3ea   : > { %p808_p2 = pneg %p807_p13 }
 0x3ec   : > { %p813_p4 = pnand %p812_p1, %p808_p2 }
 0x3ee   : > { %816 = shalt.err (!%p813_p4)
}
 0x3ef   : > { %619 = dma.vmem_to_hbm [thread:$0]  (%p1190_p12), %s475_s12, 64, %s472_s3, %s461_s21  }
 0x3f0 PF: > { %s1191_s26 = sld [smem:[#allocation12_spill]]  ;;  %p636_p0 = scmp.ge.s32.totalorder %s915_s19, 2 }
 0x3f1   : > { %s1192_s15 = sld [smem:[#allocation15_spill]] }
 0x3f6   : > { %s486_s23 = sand.u32 1, %s1191_s26  }
 0x3f7   : > { %p1193_p5 = scmp.ne.s32.totalorder %s1192_s15, 0  ;;  %s487_s27 = scalar_lea.sflag [#allocation5], %s486_s23 }
 0x3f9   : > { %p630_p7 = pnand %p636_p0, %p1193_p5 }
 0x3fb   : > { %p631_p8 = pneg %p630_p7 }
 0x3fd   : > { %870 = dma.done.wait (%p631_p8), %s487_s27, 64  }
 0x3fe   : > { %872 = vsyncadd (%p631_p8), %s487_s27, 4294967232  ;;  %s19_s19 = sadd.s32 1, %s915_s19   ;;  %s1194_s22 = sld [smem:[#allocation16_spill]] }
 0x3ff   : > { %p16_p6 = scmp.ge.s32.totalorder %s19_s19, 6   ;;  %s1195_s9 = smov %s879_s10 }
 0x400   : > { %s1196_s10 = smov %s883_s11  ;;  %s1197_s11 = smov %s1056_s4 }
 0x401   : > { %s1198_s12 = smov %s891_s13  ;;  %s1199_s13 = smov %s895_s14 }
 0x402   : > { %s1200_s14 = smov %s1059_s5  ;;  %s1201_s15 = smov %s907_s17 }
 0x403   : > { %s1202_s16 = smov %s911_s18  ;;  %s1204_s18 = smov %s1210_s7 }
 0x404   : > { %s1203_s17 = smov %s1194_s22  ;;  %18 = sbr.rel (!%p16_p6) target bundleno = 13 (0xd), region = 87 }
 0x409   :  { %492 = vsyncpa [#allocation4], 1 }
 0x40a   :  { %494 = vsyncpa [#allocation4 + $0x1], 1 }
 0x40b   :  { %495 = vsyncpa [#allocation7], 1 }
 0x40c   :  { %496 = vsyncpa [#allocation5], 1 }
 0x40d   :  { %498 = vsyncpa [#allocation5 + $0x1], 1 }

</bundles_post_ra>
